<compile_context>
chip_gen: v6e
topology: v6e:2x2x1
jax: 0.10.0
libtpu: 0.0.40
codegen_flags: <defaults>
</compile_context>

<pallas_src>
import functools
import math

import jax
import jax.numpy as jnp
from jax.experimental import pallas as pl
from jax.experimental.pallas import tpu as pltpu


def _round_up(x, m):
    return ((x + m - 1) // m) * m


# ---------------------------------------------------------------------------
# Kernels
# ---------------------------------------------------------------------------

def _logreg_kernel(x_ref, w_ref, b_ref, o_ref):
    # x_ref: (tile_n, ft_in), w_ref: (ft_in, c_pad) [pre-transposed, resident],
    # b_ref: (1, c_pad) f32, o_ref: (tile_n, c_pad).
    acc = jnp.dot(x_ref[...], w_ref[...], preferred_element_type=jnp.float32)
    o_ref[...] = (acc + b_ref[...].astype(jnp.float32)).astype(o_ref.dtype)


def _logreg_ksplit_kernel(x_ref, w_ref, b_ref, o_ref, acc_ref, *, ft_in, tile_k):
    # K-split variant for very large ft_in: grid = (row tiles, K tiles),
    # f32 accumulator in VMEM, weight streamed K-block by K-block.
    k = pl.program_id(1)

    @pl.when(k == 0)
    def _():
        acc_ref[...] = jnp.zeros_like(acc_ref)

    x = x_ref[...]
    w = w_ref[...]
    if ft_in % tile_k != 0:
        # Last K block is ragged: zero the out-of-range contraction slice of
        # BOTH operands so unspecified padding can't leak into the sum.
        valid = ft_in - k * tile_k
        lane_ids = jax.lax.broadcasted_iota(jnp.int32, (1, tile_k), 1)
        sub_ids = jax.lax.broadcasted_iota(jnp.int32, (tile_k, 1), 0)
        x = jnp.where(lane_ids < valid, x, 0)
        w = jnp.where(sub_ids < valid, w, 0)

    acc_ref[...] += jnp.dot(x, w, preferred_element_type=jnp.float32)

    @pl.when(k == pl.num_programs(1) - 1)
    def _():
        o_ref[...] = (acc_ref[...] + b_ref[...].astype(jnp.float32)).astype(o_ref.dtype)


# ---------------------------------------------------------------------------
# Wrapper
# ---------------------------------------------------------------------------

def _vmem_budget_bytes():
    """Generation-aware (v5e/v6e: 128 MiB, v7x: 64 MiB per TC) VMEM policy."""
    cap = None
    try:
        cap = getattr(pltpu.get_tpu_info(), "vmem_capacity_bytes", None)
    except Exception:
        cap = None
    if not cap:
        cap = 64 * 1024 * 1024  # conservative fallback (safe on v7x per-TC VMEM)
    budget = (cap * 3) // 5                       # ~60% of capacity for our tiles
    limit = min((cap * 3) // 4, budget * 2)       # scoped-VMEM limit we request
    return int(budget), int(limit)


def prepare_logreg_params(weight, bias):
    """One-time prep (hoist out of hot loops): transpose to [ft_in, c_pad],
    pad classes to a lane-dense multiple of 128 (zeros), bias as (1, c_pad) f32."""
    nb_classes, _ = weight.shape
    c_pad = _round_up(nb_classes, 128)
    w_t = weight.T  # [ft_in, nb_classes] — contraction on the sublane axis
    if c_pad != nb_classes:
        w_t = jnp.pad(w_t, ((0, 0), (0, c_pad - nb_classes)))
        bias = jnp.pad(bias, (0, c_pad - nb_classes))
    bias2d = bias.reshape(1, c_pad).astype(jnp.float32)
    return w_t, bias2d, nb_classes


def logreg_forward_prepared(seq, w_t, bias2d, nb_classes, *,
                            tile_n=None, tile_k=None, out_dtype=None):
    """seq: [N, ft_in]; w_t/bias2d from prepare_logreg_params.

    For a bf16 path, pass seq/w_t already in bf16 (no wrapper cast here);
    accumulation stays f32. out_dtype (e.g. jnp.bfloat16) halves output
    writeback when downstream tolerates it."""
    n, ft_in = seq.shape
    assert w_t.shape[0] == ft_in
    c_pad = w_t.shape[1]
    out_dtype = seq.dtype if out_dtype is None else out_dtype

    in_item = jnp.dtype(seq.dtype).itemsize
    w_item = jnp.dtype(w_t.dtype).itemsize
    out_item = jnp.dtype(out_dtype).itemsize
    sublane = max(8, 32 // in_item)  # 8 for f32, 16 for bf16

    budget, vmem_limit = _vmem_budget_bytes()

    # ---- row tile selection -------------------------------------------------
    if n <= sublane:
        tile_n = n  # single block equal to the full (small) row extent
    else:
        if tile_n is None:
            tile_n = 1024
        # Keep >= 2 grid steps so "parallel" can shard across TensorCores (v7x).
        tile_n = min(tile_n, _round_up(pl.cdiv(n, 2), sublane))
        tile_n = max(sublane, _round_up(tile_n, sublane))

    # Honest footprints: Pallas double-buffers every pipelined operand, even a
    # resident (constant index_map) weight block.
    # TODO(synk): pin weight/bias to a single buffer (pipeline_mode=pl.Buffered(1))
    # once that's reliably honored by the top-level Mosaic grid pipeline.
    def simple_fp(t):
        return (2 * t * ft_in * in_item + 2 * t * c_pad * out_item
                + 2 * ft_in * c_pad * w_item + 2 * c_pad * 4)

    def ksplit_fp(t, tk):
        return (2 * t * tk * in_item + 2 * t * c_pad * out_item
                + 2 * tk * c_pad * w_item + t * c_pad * 4 + 2 * c_pad * 4)

    use_ksplit = tile_k is not None
    if not use_ksplit:
        # Prefer shrinking rows only down to ~256; past that, split K instead.
        floor = min(tile_n, max(sublane, 256))
        t = tile_n
        while t > floor and simple_fp(t) > budget:
            t = max(floor, _round_up(t // 2, sublane))
        if simple_fp(t) > budget:
            use_ksplit = True
        else:
            tile_n = t

    compiler_params = None  # set per path below

    if not use_ksplit:
        grid = (pl.cdiv(n, tile_n),)
        out = pl.pallas_call(
            _logreg_kernel,
            out_shape=jax.ShapeDtypeStruct((n, c_pad), out_dtype),
            grid_spec=pltpu.PrefetchScalarGridSpec(
                num_scalar_prefetch=0,
                grid=grid,
                in_specs=[
                    # streamed row tile of the input (ragged last block is fine)
                    pl.BlockSpec((tile_n, ft_in), lambda i: (i, 0)),
                    # full (transposed, class-padded) weight, resident across steps
                    pl.BlockSpec((ft_in, c_pad), lambda i: (0, 0)),
                    # bias row, resident
                    pl.BlockSpec((1, c_pad), lambda i: (0, 0)),
                ],
                out_specs=pl.BlockSpec((tile_n, c_pad), lambda i: (i, 0)),
            ),
            compiler_params=pltpu.CompilerParams(
                dimension_semantics=("parallel",),
                vmem_limit_bytes=vmem_limit,
            ),
        )(seq, w_t, bias2d)
    else:
        # K-split path: resident weight is too large — stream weight K-blocks
        # and accumulate in an f32 VMEM scratch.
        if tile_k is None:
            tile_k = 2048
        tile_k = max(128, _round_up(tile_k, 128))  # lane-dense x block last dim
        while tile_k > 128 and ksplit_fp(tile_n, tile_k) > budget:
            tile_k = max(128, _round_up(tile_k // 2, 128))
        while tile_n > sublane and ksplit_fp(tile_n, tile_k) > budget:
            tile_n = max(sublane, _round_up(tile_n // 2, sublane))

        kernel = functools.partial(_logreg_ksplit_kernel, ft_in=ft_in, tile_k=tile_k)
        grid = (pl.cdiv(n, tile_n), pl.cdiv(ft_in, tile_k))
        out = pl.pallas_call(
            kernel,
            out_shape=jax.ShapeDtypeStruct((n, c_pad), out_dtype),
            grid_spec=pltpu.PrefetchScalarGridSpec(
                num_scalar_prefetch=0,
                grid=grid,
                in_specs=[
                    pl.BlockSpec((tile_n, tile_k), lambda i, k: (i, k)),
                    pl.BlockSpec((tile_k, c_pad), lambda i, k: (k, 0)),
                    pl.BlockSpec((1, c_pad), lambda i, k: (0, 0)),
                ],
                out_specs=pl.BlockSpec((tile_n, c_pad), lambda i, k: (i, 0)),
                scratch_shapes=[pltpu.VMEM((tile_n, c_pad), jnp.float32)],
            ),
            compiler_params=pltpu.CompilerParams(
                dimension_semantics=("parallel", "arbitrary"),
                vmem_limit_bytes=vmem_limit,
            ),
        )(seq, w_t, bias2d)

    # Strip class padding only (no row padding was added).
    if c_pad != nb_classes:
        out = out[:, :nb_classes]
    return out


def logreg_forward(seq, weight, bias, *, tile_n=None, tile_k=None, out_dtype=None):
    """seq: [N, ft_in], weight: [nb_classes, ft_in], bias: [nb_classes]."""
    w_t, bias2d, nb_classes = prepare_logreg_params(weight, bias)
    return logreg_forward_prepared(seq, w_t, bias2d, nb_classes,
                                   tile_n=tile_n, tile_k=tile_k,
                                   out_dtype=out_dtype)


def init_logreg_params(key, ft_in, nb_classes, dtype=jnp.float32):
    """Matches the PyTorch module: xavier_uniform_ weight, zero bias."""
    a = math.sqrt(6.0 / (ft_in + nb_classes))
    weight = jax.random.uniform(key, (nb_classes, ft_in), dtype=dtype,
                                minval=-a, maxval=a)
    bias = jnp.zeros((nb_classes,), dtype=dtype)
    return weight, bias


if __name__ == "__main__":
    key = jax.random.PRNGKey(0)
    k1, k2, k3, k4 = jax.random.split(key, 4)

    # 1) Tiny shapes (simple resident-weight path, single grid step).
    N, FT_IN, NB = 8, 32, 16
    seq = jax.random.normal(k1, (N, FT_IN), dtype=jnp.float32)
    w, b = init_logreg_params(k2, FT_IN, NB)
    out = jax.block_until_ready(logreg_forward(seq, w, b))
    ref = seq @ w.T + b
    assert out.shape == (N, NB)
    assert jnp.allclose(out, ref, atol=1e-5, rtol=1e-5)

    # 2) Ragged N (masked last row block, no pad/slice passes) + non-128 classes.
    N2, FT2, NB2 = 1000, 256, 7
    seq2 = jax.random.normal(k3, (N2, FT2), dtype=jnp.float32)
    w2, b2 = init_logreg_params(k4, FT2, NB2)
    b2 = b2 + 0.5  # nonzero bias so the check is meaningful
    out2 = jax.block_until_ready(logreg_forward(seq2, w2, b2, tile_n=256))
    ref2 = seq2 @ w2.T + b2
    assert out2.shape == (N2, NB2)
    assert jnp.allclose(out2, ref2, atol=1e-4, rtol=1e-4)

    # 3) Forced K-split path with a ragged contraction block (exercises the
    #    f32 accumulator + in-kernel K masking used for very large ft_in).
    N3, FT3, NB3 = 300, 200, 5
    kk1, kk2 = jax.random.split(k1, 2)
    seq3 = jax.random.normal(kk1, (N3, FT3), dtype=jnp.float32)
    w3, b3 = init_logreg_params(kk2, FT3, NB3)
    b3 = b3 - 0.25
    out3 = jax.block_until_ready(logreg_forward(seq3, w3, b3, tile_k=128))
    ref3 = seq3 @ w3.T + b3
    assert out3.shape == (N3, NB3)
    assert jnp.allclose(out3, ref3, atol=1e-4, rtol=1e-4)

    print("KERNEL_OK")
</pallas_src>

<mosaic_0001>
module attributes {stable_mosaic.version = 11 : i64} {
  func.func @_logreg_kernel(%arg0: i32, %arg1: memref<8x32xf32, #tpu.memory_space<vmem>>, %arg2: memref<32x128xf32, #tpu.memory_space<vmem>>, %arg3: memref<1x128xf32, #tpu.memory_space<vmem>>, %arg4: memref<8x128xf32, #tpu.memory_space<vmem>>) attributes {dimension_semantics = [#tpu.dimension_semantics<parallel>], iteration_bounds = array<i64: 1>, scalar_prefetch = 0 : i64, scratch_operands = 0 : i64, tpu.core_type = #tpu.core_type<tc>, window_params = [{transform_indices = @transform_0, window_bounds = array<i64: 8, 32>}, {pipeline_mode = #tpu.pipeline_mode<synchronous>, transform_indices = @transform_1, window_bounds = array<i64: 32, 128>}, {pipeline_mode = #tpu.pipeline_mode<synchronous>, transform_indices = @transform_2, window_bounds = array<i64: 1, 128>}, {transform_indices = @transform_3, window_bounds = array<i64: 8, 128>}]} {
    %c0 = arith.constant 0 : index
    %c0_0 = arith.constant 0 : index
    %0 = vector.load %arg1[%c0, %c0_0] : memref<8x32xf32, #tpu.memory_space<vmem>>, vector<8x32xf32>
    %c0_1 = arith.constant 0 : index
    %c0_2 = arith.constant 0 : index
    %1 = vector.load %arg2[%c0_1, %c0_2] : memref<32x128xf32, #tpu.memory_space<vmem>>, vector<32x128xf32>
    %cst = arith.constant dense<0.000000e+00> : vector<8x128xf32>
    %2 = tpu.matmul %0, %1, %cst {dimension_numbers = #tpu.dot_dimension_numbers<[1], [0], [0], [1], [0, 0, 1, 1], [], []>} : vector<8x32xf32>, vector<32x128xf32>, vector<8x128xf32> -> vector<8x128xf32>
    %c0_3 = arith.constant 0 : index
    %c0_4 = arith.constant 0 : index
    %3 = vector.load %arg3[%c0_3, %c0_4] : memref<1x128xf32, #tpu.memory_space<vmem>>, vector<1x128xf32>
    %4 = vector.broadcast %3 : vector<1x128xf32> to vector<8x128xf32>
    %5 = arith.addf %2, %4 : vector<8x128xf32>
    %c0_5 = arith.constant 0 : index
    %c0_6 = arith.constant 0 : index
    %6 = vector.load %arg4[%c0_5, %c0_6] : memref<8x128xf32, #tpu.memory_space<vmem>>, vector<8x128xf32>
    tpu.vector_store %arg4[%c0_5, %c0_6], %5 {strides = array<i32>} : memref<8x128xf32, #tpu.memory_space<vmem>>, vector<8x128xf32>,
    return
  }
  func.func @transform_0(%arg0: i32) -> (i32, i32) {
    %c0_i32 = arith.constant 0 : i32
    %c0_i32_0 = arith.constant 0 : i32
    return %arg0, %c0_i32 : i32, i32
  }
  func.func @transform_1(%arg0: i32) -> (i32, i32) {
    %c0_i32 = arith.constant 0 : i32
    %c0_i32_0 = arith.constant 0 : i32
    %c0_i32_1 = arith.constant 0 : i32
    return %c0_i32, %c0_i32_0 : i32, i32
  }
  func.func @transform_2(%arg0: i32) -> (i32, i32) {
    %c0_i32 = arith.constant 0 : i32
    %c0_i32_0 = arith.constant 0 : i32
    %c0_i32_1 = arith.constant 0 : i32
    return %c0_i32, %c0_i32_0 : i32, i32
  }
  func.func @transform_3(%arg0: i32) -> (i32, i32) {
    %c0_i32 = arith.constant 0 : i32
    %c0_i32_0 = arith.constant 0 : i32
    return %arg0, %c0_i32 : i32, i32
  }
}

</mosaic_0001>

<bundles_post_ra>
// kernel: tpu_custom_call.1
= control target key start
LH: loop header
LB: loop body
LE: loop exit
PB: predicated region body
PF: predicated region fallthrough
CT: control target
= control target key end

     0   :  { %8 = vsyncpa [#allocation3], 0  ;;  %s274_s0 = inlined_call_operand.hbm [shape: f32[8,32], index: 0, kind: input, shape index: {}]   ;;  %s275_s1 = inlined_call_operand.hbm [shape: f32[32,128], index: 1, kind: input, shape index: {}]   ;;  %s276_s2 = inlined_call_operand.vmem [shape: f32[1,128], index: 2, kind: input, shape index: {}]   ;;  %s277_s3 = inlined_call_operand.hbm [shape: f32[8,128], index: 3, kind: output, shape index: {}]  }
   0x1   :  { %9 = vsyncpa [#allocation6], 0 }
   0x2   :  { %10 = vsyncpa [#allocation4], 0  ;;  %s235_s12 = smov [#allocation2]   ;;  %s236_s14 = smov [#allocation5]  }
   0x3   :  { %s17_s13 = sshll.u32 %s235_s12, 4  ;;  %s26_s15 = sshll.u32 %s236_s14, 4  ;;  %s18_s13 = int_to_ptr.vmem [resolvable:$true] %s17_s13  ;;  %s27_s15 = int_to_ptr.vmem [resolvable:$true] %s26_s15 }
   0x4   :  { %s177_s16 = scalar_lea.vmem %s18_s13, 128  ;;  %p182_p1 = scmp.lt.s32.totalorder %s18_s13, %s18_s13 }
   0x5   :  { %p178_p0 = scmp.ne.s32.totalorder %s18_s13, %s177_s16  ;;  %p183_p2 = scmp.lt.s32.totalorder %s177_s16, %s177_s16 }
   0x7   :  { %p184_p3 = por %p183_p2, %p182_p1 }
   0x9   :  { %p185_p4 = pnand %p184_p3, %p178_p0 }
   0xb   :  { %188 = shalt.err (!%p185_p4)
}
   0xc   :  { %20 = dma.hbm_to_vmem [thread:$0]  %s274_s0, 128, %s18_s13, [#allocation3]  }
   0xd   :  { %s197_s19 = scalar_lea.vmem %s27_s15, 512  ;;  %p202_p6 = scmp.lt.s32.totalorder %s27_s15, %s27_s15 }
   0xe   :  { %p198_p5 = scmp.ne.s32.totalorder %s27_s15, %s197_s19  ;;  %p203_p7 = scmp.lt.s32.totalorder %s197_s19, %s197_s19 }
  0x10   :  { %p204_p8 = por %p203_p7, %p202_p6 }
  0x12   :  { %p205_p9 = pnand %p204_p8, %p198_p5 }
  0x14   :  { %208 = shalt.err (!%p205_p9)
}
  0x15   :  { %s237_s20 = smov 128   ;;  %s238_s21 = smov 8  }
  0x16   :  { %32 = dma.hbm_to_vmem [thread:$0]  %s275_s1, 512, %s27_s15, [#allocation6], %s237_s20, %s237_s20, %s238_s21  }
  0x17   :  { %229 = dma.done.wait [#allocation3], 128  }
  0x18   :  { %230 = vsyncadd [#allocation3], 4294967168 }
  0x19   :  { %231 = dma.done.wait [#allocation6], 512  }
  0x1a   :  { %232 = vsyncadd [#allocation6], 4294966784  ;;  %v239_v0 = vmov 0.0   ;;  %vm240_vm0 = vmmov 0   ;;  %v45_v1 = vld [vmem:[#allocation5 + $0x18] sm:$0xff]  ;;  %v44_v2 = vld [vmem:[#allocation5 + $0x10] sm:$0xff] }
  0x1b   :  { %151 = vmatprep.subr.mxu0 %v239_v0  ;;  %159 = vmatprep.mubr.msk.f32.mxu0 %vm240_vm0, %v239_v0  ;;  %v43_v3 = vld [vmem:[#allocation5 + $0x8] sm:$0xff]  ;;  %v42_v4 = vld [vmem:[#allocation5] sm:$0xff]  ;;  %v41_v5 = vld [vmem:[#allocation2] sm:$0xff]  ;;  %vm53_vm1 = vcmask 261120   ;;  %s241_s24 = smov [#allocation7]  }
  0x1c   :  { %152 = vmatpush3.msra.mxu0 %v45_v1  ;;  %v144_v6 = vld [vmem:[%s276_s2] ss:$0 sm:$0xff]  ;;  %s134_s25 = sshll.u32 %s241_s24, 4  ;;  %s135_s25 = int_to_ptr.vmem [resolvable:$true] %s134_s25 }
  0x1d   :  { %153 = vmatprep.subr.mxu0 %v239_v0  ;;  %s209_s26 = scalar_lea.vmem %s135_s25, 128  ;;  %p214_p11 = scmp.lt.s32.totalorder %s135_s25, %s135_s25 }
  0x1e   :  { %154 = vmatpush3.msra.mxu0 %v44_v2  ;;  %p210_p10 = scmp.ne.s32.totalorder %s135_s25, %s209_s26  ;;  %p215_p12 = scmp.lt.s32.totalorder %s209_s26, %s209_s26 }
  0x1f   :  { %155 = vmatprep.subr.mxu0 %v239_v0 }
  0x20   :  { %156 = vmatpush3.msra.mxu0 %v43_v3  ;;  %p216_p13 = por %p215_p12, %p214_p11 }
  0x21   :  { %157 = vmatprep.subr.mxu0 %v239_v0 }
  0x22   :  { %158 = vmatpush3.msra.mxu0 %v42_v4  ;;  %p217_p0 = pnand %p216_p13, %p210_p10 }
  0x23   :  { %160 = vmatmul.mubr.msk.f32.vlgmr.msra.gmra.mxu0 %vm53_vm1, %v41_v5 }
  0xe3   :  { %v123_v7 = vpop.f32.mrf.mxu0 }
  0xe4   :  { %v124_v8 = vadd.f32 %v144_v6, %v123_v7 }
  0xe5   :  { %v161_v9 = vpop.f32.mrf.mxu0 }
  0xe6   :  { %127 = vst [vmem:[#allocation7] sm:$0xff] %v124_v8 }
  0xe7   :  { %220 = shalt.err (!%p217_p0)
}
  0xe8   :  { %137 = dma.vmem_to_hbm [thread:$0]  %s135_s25, 128, %s277_s3, [#allocation4]  }
  0xe9   :  { %233 = dma.done.wait [#allocation4], 128  }
  0xea   :  { %234 = vsyncadd [#allocation4], 4294967168 }
  0xeb   :  { %141 = vsyncpa [#allocation3], 1 }
  0xec   :  { %142 = vsyncpa [#allocation6], 1 }
  0xed   :  { %143 = vsyncpa [#allocation4], 1 }

</bundles_post_ra>
